<compile_context>
chip_gen: v7x
topology: tpu7x:2x2x1
jax: 0.10.0
libtpu: 0.0.40
codegen_flags: <defaults>
</compile_context>

<pallas_src>
import functools

import jax
import jax.numpy as jnp
from jax.experimental import pallas as pl
from jax.experimental.pallas import tpu as pltpu


def _round_up(x: int, m: int) -> int:
    return ((x + m - 1) // m) * m


def _pick_tile(h_pad: int, cap: int) -> int:
    """Largest multiple of 128 that divides h_pad and is <= cap."""
    t = max(128, (min(cap, h_pad) // 128) * 128)
    while h_pad % t:
        t -= 128
    return t


def _vmem_limit_bytes() -> int:
    """Generation-aware scoped-VMEM budget (v5e/v6e: 128 MiB phys, v7x: 64 MiB)."""
    try:
        cap = pltpu.get_tpu_info().vmem_capacity_bytes
    except Exception:
        cap = 64 * 1024 * 1024  # conservative (v7x-sized) fallback
    # ~96 MiB on 128-MiB parts, ~48 MiB on 64-MiB parts.
    return int(min(cap * 3 // 4, 100 * 1024 * 1024))


# ----------------------------------------------------------------------------
# Fused path: W fully VMEM-resident, K axis collapsed, one x stream.
# ----------------------------------------------------------------------------
def _fused_kernel(x_ref, w_ref, b_ref, o_ref, *, compute_dtype):
    # The single x tile is BOTH the MXU LHS and the residual (K == N == H).
    x = x_ref[...]
    acc = jnp.dot(x.astype(compute_dtype), w_ref[...],
                  preferred_element_type=jnp.float32)
    acc += b_ref[...].astype(jnp.float32)      # (1, N) broadcasts over rows
    acc += x.astype(jnp.float32)               # residual, full precision
    o_ref[...] = acc.astype(o_ref.dtype)


# ----------------------------------------------------------------------------
# Tiled-K fallback: only when W does not fit VMEM.  tk == tn (square W), so the
# (i, k) LHS tile of x coincides with the (i, j) output tile when k == j and
# the residual is added there -> no second HBM stream of x.
# ----------------------------------------------------------------------------
def _tiled_kernel(x_ref, w_ref, b_ref, o_ref, *scratch, compute_dtype):
    # Accumulate into the f32 scratch if present, else directly into the
    # (f32) output tile, which stays VMEM-resident across the K axis.
    acc_ref = scratch[0] if scratch else o_ref
    j = pl.program_id(1)
    k = pl.program_id(2)

    @pl.when(k == 0)
    def _():
        acc_ref[...] = jnp.broadcast_to(
            b_ref[...].astype(jnp.float32), acc_ref.shape)

    x = x_ref[...]
    acc_ref[...] += jnp.dot(x.astype(compute_dtype), w_ref[...],
                            preferred_element_type=jnp.float32)

    @pl.when(k == j)
    def _():
        acc_ref[...] += x.astype(jnp.float32)   # residual, exactly once

    if scratch:  # only needed when out dtype != f32
        @pl.when(k == pl.num_programs(2) - 1)
        def _():
            o_ref[...] = acc_ref[...].astype(o_ref.dtype)


@functools.partial(
    jax.jit,
    static_argnames=("compute_dtype", "tile_m", "tile_n", "force_tiled"))
def residual_linear(x, w, b, *, compute_dtype=jnp.bfloat16, tile_m=512,
                    tile_n=512, force_tiled=False):
    """Residual(Linear): (x @ W + b) + x.

    x: (B, S, H); w: (H, H) stored (in, out); b: (H,).
    compute_dtype: MXU operand dtype (default bf16); accumulation is always
    f32 and the residual is added from the un-cast x.
    """
    B, S, H = x.shape
    assert w.shape == (H, H) and b.shape == (H,), "Residual(Linear) needs square W"
    M = B * S
    out_dtype = x.dtype
    cd = jnp.dtype(compute_dtype) if compute_dtype is not None else jnp.dtype(x.dtype)

    H_pad = _round_up(H, 128)                 # lane-dense N / K
    # M tile: granule 16; keep >= 2 M-blocks when possible so v7x's two
    # TensorCores both get work along the leading 'parallel' axis.
    tm = min(tile_m, _round_up(M, 16))
    if M >= 32 and _round_up(M, tm) == tm:
        tm = _round_up(-(-M // 2), 16)
    M_pad = _round_up(M, tm)

    vmem_limit = _vmem_limit_bytes()

    # Pad / cast only when needed (each wrapper pad/cast is an extra HBM pass).
    xf = x.reshape(M, H)
    if (M_pad, H_pad) != (M, H):
        xf = jnp.pad(xf, ((0, M_pad - M), (0, H_pad - H)))
    w_c = w.astype(cd)                        # one-time parameter cast
    if H_pad != H:
        w_c = jnp.pad(w_c, ((0, H_pad - H), (0, H_pad - H)))
        b_p = jnp.pad(b.reshape(1, H), ((0, 0), (0, H_pad - H)))
    else:
        b_p = b.reshape(1, H)

    x_isz = jnp.dtype(xf.dtype).itemsize
    w_isz = cd.itemsize
    o_isz = jnp.dtype(out_dtype).itemsize

    # Fused-path VMEM footprint (conservative: everything double-buffered).
    fused_bytes = (2 * H_pad * H_pad * w_isz
                   + 2 * H_pad * jnp.dtype(b_p.dtype).itemsize
                   + 2 * tm * H_pad * x_isz
                   + 2 * tm * H_pad * o_isz)
    use_fused = (not force_tiled) and fused_bytes <= int(vmem_limit * 0.9)

    cparams = pltpu.CompilerParams(
        dimension_semantics=(("parallel",) if use_fused
                             else ("parallel", "parallel", "arbitrary")),
        vmem_limit_bytes=vmem_limit)

    cost = pl.CostEstimate(
        flops=2 * M_pad * H_pad * H_pad,
        transcendentals=0,
        bytes_accessed=(M_pad * H_pad * x_isz + H_pad * H_pad * w_isz
                        + H_pad * jnp.dtype(b_p.dtype).itemsize
                        + M_pad * H_pad * o_isz))

    if use_fused:
        out = pl.pallas_call(
            functools.partial(_fused_kernel, compute_dtype=cd),
            out_shape=jax.ShapeDtypeStruct((M_pad, H_pad), out_dtype),
            grid=(M_pad // tm,),
            in_specs=[
                pl.BlockSpec((tm, H_pad), lambda i: (i, 0)),      # x (LHS + residual)
                pl.BlockSpec((H_pad, H_pad), lambda i: (0, 0)),   # W, VMEM-resident
                pl.BlockSpec((1, H_pad), lambda i: (0, 0)),       # bias
            ],
            out_specs=pl.BlockSpec((tm, H_pad), lambda i: (i, 0)),
            compiler_params=cparams,
            cost_estimate=cost,
        )(xf, w_c, b_p)
    else:
        tnk = _pick_tile(H_pad, tile_n)       # tn == tk (square W)
        grid = (M_pad // tm, H_pad // tnk, H_pad // tnk)
        need_scratch = jnp.dtype(out_dtype) != jnp.float32
        scratch = [pltpu.VMEM((tm, tnk), jnp.float32)] if need_scratch else []
        out = pl.pallas_call(
            functools.partial(_tiled_kernel, compute_dtype=cd),
            out_shape=jax.ShapeDtypeStruct((M_pad, H_pad), out_dtype),
            grid=grid,
            in_specs=[
                pl.BlockSpec((tm, tnk), lambda i, j, k: (i, k)),   # x (LHS, + residual at k==j)
                pl.BlockSpec((tnk, tnk), lambda i, j, k: (k, j)),  # W
                pl.BlockSpec((1, tnk), lambda i, j, k: (0, j)),    # bias
            ],
            out_specs=pl.BlockSpec((tm, tnk), lambda i, j, k: (i, j)),
            scratch_shapes=scratch,
            compiler_params=cparams,
            cost_estimate=cost,
        )(xf, w_c, b_p)

    if (M_pad, H_pad) != (M, H):
        out = out[:M, :H]
    return out.reshape(B, S, H)


if __name__ == "__main__":
    B, S, H = 2, 8, 32
    key = jax.random.PRNGKey(0)
    kx, kw, kb = jax.random.split(key, 3)

    x = jax.random.normal(kx, (B, S, H), dtype=jnp.float32)
    # Deterministic parameter init (Linear(H, H)): W stored as (in, out).
    w = jax.random.normal(kw, (H, H), dtype=jnp.float32) * (1.0 / jnp.sqrt(H))
    b = jax.random.normal(kb, (H,), dtype=jnp.float32) * 0.01

    ref = (jnp.einsum("bsh,hk->bsk", x, w) + b) + x

    # 1) Default: fused (VMEM-resident W) path, bf16 MXU operands, f32 acc/residual.
    out = residual_linear(x, w, b)
    jax.block_until_ready(out)
    assert out.shape == (B, S, H)
    assert jnp.allclose(out, ref, atol=5e-2, rtol=5e-2)

    # 2) Exact path: f32 MXU operands on the fused path.
    out_f32 = residual_linear(x, w, b, compute_dtype=jnp.float32)
    jax.block_until_ready(out_f32)
    assert jnp.allclose(out_f32, ref, atol=1e-5, rtol=1e-5)

    # 3) Tiled-K fallback (used only when W does not fit VMEM), forced here.
    out_tiled = residual_linear(x, w, b, compute_dtype=jnp.float32,
                                force_tiled=True)
    jax.block_until_ready(out_tiled)
    assert jnp.allclose(out_tiled, ref, atol=1e-5, rtol=1e-5)

    # 4) Tiled-K fallback with bf16 input/output (exercises the f32 scratch path).
    x_bf16 = x.astype(jnp.bfloat16)
    ref_bf16 = (jnp.einsum("bsh,hk->bsk", x_bf16.astype(jnp.float32), w) + b
                ) + x_bf16.astype(jnp.float32)
    out_bf16 = residual_linear(x_bf16, w, b, force_tiled=True)
    jax.block_until_ready(out_bf16)
    assert jnp.allclose(out_bf16.astype(jnp.float32), ref_bf16,
                        atol=5e-2, rtol=5e-2)

    print("KERNEL_OK")
</pallas_src>

<mosaic_0001>
module attributes {stable_mosaic.version = 11 : i64} {
  func.func @_fused_kernel(%arg0: i32, %arg1: memref<16x128xf32, #tpu.memory_space<vmem>>, %arg2: memref<128x128xbf16, #tpu.memory_space<vmem>>, %arg3: memref<1x128xf32, #tpu.memory_space<vmem>>, %arg4: memref<16x128xf32, #tpu.memory_space<vmem>>) attributes {dimension_semantics = [#tpu.dimension_semantics<parallel>], iteration_bounds = array<i64: 1>, scalar_prefetch = 0 : i64, scratch_operands = 0 : i64, tpu.core_type = #tpu.core_type<tc>, window_params = [{transform_indices = @transform_0, window_bounds = array<i64: 16, 128>}, {pipeline_mode = #tpu.pipeline_mode<synchronous>, transform_indices = @transform_1, window_bounds = array<i64: 128, 128>}, {pipeline_mode = #tpu.pipeline_mode<synchronous>, transform_indices = @transform_2, window_bounds = array<i64: 1, 128>}, {transform_indices = @transform_3, window_bounds = array<i64: 16, 128>}]} {
    %c0 = arith.constant 0 : index
    %c0_0 = arith.constant 0 : index
    %0 = vector.load %arg1[%c0, %c0_0] : memref<16x128xf32, #tpu.memory_space<vmem>>, vector<16x128xf32>
    %1 = arith.truncf %0 : vector<16x128xf32> to vector<16x128xbf16>
    %c0_1 = arith.constant 0 : index
    %c0_2 = arith.constant 0 : index
    %2 = vector.load %arg2[%c0_1, %c0_2] : memref<128x128xbf16, #tpu.memory_space<vmem>>, vector<128x128xbf16>
    %cst = arith.constant dense<0.000000e+00> : vector<16x128xf32>
    %3 = tpu.matmul %1, %2, %cst {dimension_numbers = #tpu.dot_dimension_numbers<[1], [0], [0], [1], [0, 0, 1, 1], [], []>} : vector<16x128xbf16>, vector<128x128xbf16>, vector<16x128xf32> -> vector<16x128xf32>
    %c0_3 = arith.constant 0 : index
    %c0_4 = arith.constant 0 : index
    %4 = vector.load %arg3[%c0_3, %c0_4] : memref<1x128xf32, #tpu.memory_space<vmem>>, vector<1x128xf32>
    %5 = vector.broadcast %4 : vector<1x128xf32> to vector<16x128xf32>
    %6 = arith.addf %3, %5 : vector<16x128xf32>
    %7 = arith.addf %6, %0 : vector<16x128xf32>
    %c0_5 = arith.constant 0 : index
    %c0_6 = arith.constant 0 : index
    %8 = vector.load %arg4[%c0_5, %c0_6] : memref<16x128xf32, #tpu.memory_space<vmem>>, vector<16x128xf32>
    tpu.vector_store %arg4[%c0_5, %c0_6], %7 {strides = array<i32>} : memref<16x128xf32, #tpu.memory_space<vmem>>, vector<16x128xf32>,
    return
  }
  func.func @transform_0(%arg0: i32) -> (i32, i32) {
    %c0_i32 = arith.constant 0 : i32
    %c0_i32_0 = arith.constant 0 : i32
    return %arg0, %c0_i32 : i32, i32
  }
  func.func @transform_1(%arg0: i32) -> (i32, i32) {
    %c0_i32 = arith.constant 0 : i32
    %c0_i32_0 = arith.constant 0 : i32
    %c0_i32_1 = arith.constant 0 : i32
    return %c0_i32, %c0_i32_0 : i32, i32
  }
  func.func @transform_2(%arg0: i32) -> (i32, i32) {
    %c0_i32 = arith.constant 0 : i32
    %c0_i32_0 = arith.constant 0 : i32
    %c0_i32_1 = arith.constant 0 : i32
    return %c0_i32, %c0_i32_0 : i32, i32
  }
  func.func @transform_3(%arg0: i32) -> (i32, i32) {
    %c0_i32 = arith.constant 0 : i32
    %c0_i32_0 = arith.constant 0 : i32
    return %arg0, %c0_i32 : i32, i32
  }
}

</mosaic_0001>

<bundles_post_ra>
// kernel: residual_linear.1
= control target key start
LH: loop header
LB: loop body
LE: loop exit
PB: predicated region body
PF: predicated region fallthrough
CT: control target
= control target key end

     0   :  { %v186_v0 = vmov 0.0   ;;  %vm187_vm0 = vmmov 0   ;;  %s247_s1 = inlined_call_operand.vmem [shape: bf16[128,128], index: 1, kind: input, shape index: {}]   ;;  %s248_s0 = inlined_call_operand.vmem [shape: f32[16,128], index: 0, kind: input, shape index: {}]   ;;  %s249_s2 = inlined_call_operand.vmem [shape: f32[1,128], index: 2, kind: input, shape index: {}]   ;;  %s250_s3 = inlined_call_operand.vmem [shape: f32[16,128], index: 3, kind: output, shape index: {}]  }
   0x1   :  { %156 = vmatprep.subr.bf16.mxu0 %v186_v0  ;;  %v178_v1 = vld [vmem:[%s247_s1] sm:$0xff]   ;;  %172 = vmatprep.mubr.msk.bf16.mxu0 %vm187_vm0, %v186_v0  ;;  %v179_v2 = vld [vmem:[%s247_s1 + $0x8] sm:$0xff]   ;;  %v180_v3 = vld [vmem:[%s247_s1 + $0x10] sm:$0xff]  }
   0x2   :  { %157 = vmatpush3.bf16.msra.mxu0 %v178_v1  ;;  %v181_v4 = vld [vmem:[%s247_s1 + $0x18] sm:$0xff]   ;;  %v182_v5 = vld [vmem:[%s247_s1 + $0x20] sm:$0xff]   ;;  %v183_v6 = vld [vmem:[%s247_s1 + $0x28] sm:$0xff]  }
   0x3   :  { %158 = vmatprep.subr.bf16.mxu0 %v186_v0  ;;  %v184_v7 = vld [vmem:[%s247_s1 + $0x30] sm:$0xff]   ;;  %v185_v8 = vld [vmem:[%s247_s1 + $0x38] sm:$0xff]   ;;  %v15_v9 = vld [vmem:[%s248_s0] sm:$0xff] }
   0x4   :  { %v16_v10 = vld [vmem:[%s248_s0 + $0x8] sm:$0xff]  ;;  %v138_v12 = vld [vmem:[%s249_s2] ss:$0 sm:$0xff] }
   0x5   :  { %v17_v11 = vpack.c.bf16 %v16_v10, %v15_v9 }
   0x6   :  { %159 = vmatpush3.bf16.msra.mxu0 %v179_v2 }
   0x7   :  { %160 = vmatprep.subr.bf16.mxu0 %v186_v0 }
   0xa   :  { %161 = vmatpush3.bf16.msra.mxu0 %v180_v3 }
   0xb   :  { %162 = vmatprep.subr.bf16.mxu0 %v186_v0 }
   0xe   :  { %163 = vmatpush3.bf16.msra.mxu0 %v181_v4 }
   0xf   :  { %164 = vmatprep.subr.bf16.mxu0 %v186_v0 }
  0x12   :  { %165 = vmatpush3.bf16.msra.mxu0 %v182_v5 }
  0x13   :  { %166 = vmatprep.subr.bf16.mxu0 %v186_v0 }
  0x16   :  { %167 = vmatpush3.bf16.msra.mxu0 %v183_v6 }
  0x17   :  { %168 = vmatprep.subr.bf16.mxu0 %v186_v0 }
  0x1a   :  { %169 = vmatpush3.bf16.msra.mxu0 %v184_v7 }
  0x1b   :  { %170 = vmatprep.subr.bf16.mxu0 %v186_v0 }
  0x1e   :  { %171 = vmatpush3.bf16.msra.mxu0 %v185_v8 }
  0x21   :  { %173 = vmatmul.mubr.bf16.vlgmr.msra.gmra.mrb[0].mxu0 %v17_v11 }
  0xf4   :  { %v123_v13 = vpop.f32.mrb[0].mxu0 }
  0xf5   :  { %v124_v14 = vadd.f32 %v138_v12, %v123_v13  ;;  %v174_v15 = vpop.f32.mrb[1].mxu0 }
  0xf6   :  { %v126_v16 = vpop.f32.mrb[2].mxu0 }
  0xf7   :  { %v130_v17 = vadd.f32 %v124_v14, %v15_v9  ;;  %v127_v18 = vadd.f32 %v138_v12, %v126_v16  ;;  %v175_v19 = vpop.f32.mrb[3].mxu0 }
  0xf9   :  { %132 = vst [vmem:[%s250_s3] sm:$0xff] %v130_v17  ;;  %v131_v20 = vadd.f32 %v127_v18, %v16_v10 }
  0xfb   :  { %133 = vst [vmem:[%s250_s3 + $0x8] sm:$0xff] %v131_v20 }

</bundles_post_ra>
